<compile_context>
chip_gen: v7x
topology: tpu7x:2x2x1
jax: 0.10.0
libtpu: 0.0.40
codegen_flags: <defaults>
</compile_context>

<pallas_src>
import functools
import math

import jax
import jax.numpy as jnp
from jax.experimental import pallas as pl
from jax.experimental.pallas import tpu as pltpu


_EPS = 2.220446049250313e-16      # np.finfo(float).eps, as in SparseDispatcher.combine


def _round_up(n, m):
    return ((n + m - 1) // m) * m


def _pick_batch_tile(b, block_b):
    """Batch tile (multiple of 8) and padded batch size (multiple of the tile)."""
    tb = min(block_b, _round_up(b, 8))
    tb = _round_up(tb, 8)
    b_pad = _round_up(b, tb)
    return tb, b_pad


def _pick_k_tile(d, max_tk=512):
    """Contraction tile for the expert matmul (multiple of 128 or the full dim)."""
    if d <= max_tk:
        return d
    if d % 128 == 0:
        for tk in range(max_tk, 0, -128):
            if d % tk == 0:
                return tk
    return d  # fallback: single full-K tile


# ----------------------------------------------------------------------------
# One-time parameter preprocessing (hoisted out of the forward path)
# ----------------------------------------------------------------------------
def prepare_moe_params(params, *, train=True):
    w_gate, w_noise = params["w_gate"], params["w_noise"]
    D, E = w_gate.shape

    # Fused gating weight: [D, 2E] at train time (clean logits + noise stddev in
    # one MXU stream), [D, E] at eval (skip the w_noise half entirely).
    w_g = jnp.concatenate([w_gate, w_noise], axis=1) if train else w_gate
    n = w_g.shape[1]
    n_pad = _round_up(n, 128)                       # lane-dense logit stores
    if n_pad != n:
        w_g = jnp.pad(w_g, ((0, 0), (0, n_pad - n)))
    w_g = w_g.astype(jnp.bfloat16)

    w_e = params["w_experts"]                       # [E, D, Dout]
    b_e = params["b_experts"]                       # [E, Dout]
    _, _, Dout = w_e.shape
    dout_p = _round_up(Dout, 128)                   # lane-dense output stores
    if dout_p != Dout:
        w_e = jnp.pad(w_e, ((0, 0), (0, 0), (0, dout_p - Dout)))
        b_e = jnp.pad(b_e, ((0, 0), (0, dout_p - Dout)))

    return {
        "w_gating": w_g,                            # [D, n_pad] bf16
        "gating_has_noise": bool(train),
        "num_experts": E,
        "d_in": D,
        "d_out": Dout,
        "dout_p": dout_p,
        "w_experts_bf16": w_e.astype(jnp.bfloat16), # [E, D, dout_p] bf16
        "b_experts": b_e.reshape(E, 1, dout_p).astype(jnp.float32),
    }


# ----------------------------------------------------------------------------
# Kernel 1: fused gating logits   out = x @ concat([w_gate, w_noise]) (bf16 MXU)
# ----------------------------------------------------------------------------
def _gating_kernel(x_ref, w_ref, out_ref):
    out_ref[...] = jnp.dot(x_ref[...].astype(jnp.bfloat16), w_ref[...],
                           preferred_element_type=jnp.float32)


def gating_logits(x_p, w_g_bf16, *, tb):
    Bp, D = x_p.shape
    n_pad = w_g_bf16.shape[1]
    return pl.pallas_call(
        _gating_kernel,
        out_shape=jax.ShapeDtypeStruct((Bp, n_pad), jnp.float32),
        grid=(Bp // tb,),
        in_specs=[
            pl.BlockSpec((tb, D), lambda i: (i, 0)),
            pl.BlockSpec((D, n_pad), lambda i: (0, 0)),
        ],
        out_specs=pl.BlockSpec((tb, n_pad), lambda i: (i, 0)),
        compiler_params=pltpu.CompilerParams(dimension_semantics=("parallel",)),
    )(x_p, w_g_bf16)


# ----------------------------------------------------------------------------
# Kernel 2: per-expert LinearDP + SparseDispatcher.combine
#   expert e:   z_e = (x + scale_e * base_noise) @ W_e + b_e     (bf16 MXU, f32 acc)
#   combine:    y   = log( clamp_eps( sum_e gates[:, e] * exp(z_e) ) )
#   grid = (B//tb, E, D//tk); batch "parallel", expert & K axes "arbitrary".
# ----------------------------------------------------------------------------
def _expert_combine_kernel(x_ref, n_ref, w_ref, b_ref, g_ref, y_ref,
                           zacc_ref, acc_ref, *, noise_coeff):
    e = pl.program_id(1)
    kt = pl.program_id(2)
    n_e = pl.num_programs(1)
    n_kt = pl.num_programs(2)

    @pl.when(jnp.logical_and(e == 0, kt == 0))
    def _():
        acc_ref[...] = jnp.zeros_like(acc_ref)

    @pl.when(kt == 0)
    def _():
        zacc_ref[...] = jnp.zeros_like(zacc_ref)

    # DP noise: base N(0,1) rescaled per expert (expert 0 has zero scale).
    scale = jnp.float32(noise_coeff) * e.astype(jnp.float32)
    xe = (x_ref[...] + scale * n_ref[...]).astype(jnp.bfloat16)

    # expert linear layer K-tile (MXU bf16, f32 accumulation)
    zacc_ref[...] += jnp.dot(xe, w_ref[0], preferred_element_type=jnp.float32)

    @pl.when(kt == n_kt - 1)
    def _():
        z = zacc_ref[...] + b_ref[0]                           # (tb, dout_p)
        g = g_ref[0]                                           # (tb, 1) gate column
        # Only rows with gate > 0 were dispatched to this expert in the reference;
        # masking avoids 0*inf = nan on exp overflow.
        acc_ref[...] += jnp.where(g > 0.0, g * jnp.exp(z), 0.0)

        @pl.when(e == n_e - 1)
        def _():
            combined = acc_ref[...]
            combined = jnp.where(combined == 0.0, jnp.float32(_EPS), combined)
            y_ref[...] = jnp.log(combined)


def moe_experts_combine(x_p, base_noise, w_e_bf16, b3, gates_eb1, *, noise_coeff,
                        tb, tk, vmem_limit_bytes=None):
    Bp, D = x_p.shape
    E, _, dout_p = w_e_bf16.shape
    n_bt = Bp // tb
    n_kt = D // tk

    kernel = functools.partial(_expert_combine_kernel, noise_coeff=noise_coeff)

    cp = dict(dimension_semantics=("parallel", "arbitrary", "arbitrary"))
    if vmem_limit_bytes is not None:
        cp["vmem_limit_bytes"] = vmem_limit_bytes   # re-derive for v7x (64 MiB VMEM)

    return pl.pallas_call(
        kernel,
        out_shape=jax.ShapeDtypeStruct((Bp, dout_p), jnp.float32),
        grid=(n_bt, E, n_kt),
        in_specs=[
            pl.BlockSpec((tb, tk), lambda bt, e, kt: (bt, kt)),           # x tile
            pl.BlockSpec((tb, tk), lambda bt, e, kt: (bt, kt)),           # base noise tile
            pl.BlockSpec((1, tk, dout_p), lambda bt, e, kt: (e, kt, 0)),  # W_e K-tile (bf16)
            pl.BlockSpec((1, 1, dout_p), lambda bt, e, kt: (e, 0, 0)),    # b_e
            pl.BlockSpec((1, tb, 1), lambda bt, e, kt: (e, bt, 0)),       # gate column of expert e
        ],
        out_specs=pl.BlockSpec((tb, dout_p), lambda bt, e, kt: (bt, 0)),
        scratch_shapes=[
            pltpu.VMEM((tb, dout_p), jnp.float32),   # per-expert z accumulator
            pltpu.VMEM((tb, dout_p), jnp.float32),   # combine accumulator
        ],
        compiler_params=pltpu.CompilerParams(**cp),
    )(x_p, base_noise, w_e_bf16, b3, gates_eb1)


# ----------------------------------------------------------------------------
# Full MoE forward (glue around the two kernels)
# ----------------------------------------------------------------------------
def moe_forward(x, prep, *, k=1, train=True, noise_key=None, noise_epsilon=0.01,
                block_b=256, vmem_limit_bytes=None):
    B, D = x.shape
    E = prep["num_experts"]
    d_out = prep["d_out"]

    tb, Bp = _pick_batch_tile(B, block_b)
    tk = _pick_k_tile(D)

    key_gate, key_dp = jax.random.split(noise_key)

    x_p = jnp.pad(x, ((0, Bp - B), (0, 0))) if Bp != B else x

    # noisy_top_k_gating: logits via fused Pallas matmul; the tiny [B, E]
    # top-k/softmax/scatter glue stays in JAX.
    logits_all = gating_logits(x_p, prep["w_gating"], tb=tb)[:B]
    clean_logits = logits_all[:, :E]
    if train and prep["gating_has_noise"]:
        raw_noise = logits_all[:, E:2 * E]
        noise_stddev = jax.nn.softplus(raw_noise) + noise_epsilon
        logits = clean_logits + jax.random.normal(
            key_gate, clean_logits.shape, jnp.float32) * noise_stddev
    else:
        logits = clean_logits

    top_logits, top_indices = jax.lax.top_k(logits, min(k + 1, E))
    top_k_logits = top_logits[:, :k]
    top_k_indices = top_indices[:, :k]
    top_k_gates = jax.nn.softmax(top_k_logits, axis=1)
    gates = jnp.sum(
        jax.nn.one_hot(top_k_indices, E, dtype=jnp.float32) * top_k_gates[..., None],
        axis=1,
    )  # [B, E], matches zeros.scatter(1, top_k_indices, top_k_gates)

    gates_p = jnp.pad(gates, ((0, Bp - B), (0, 0))) if Bp != B else gates
    gates_eb1 = jnp.transpose(gates_p)[:, :, None]   # [E, Bp, 1] for per-expert BlockSpec

    # LinearDP: scale_i = 0.1*i, dp_del = 0.05, dp_eps = 1.0.  One base N(0,1)
    # tensor, rescaled by expert index inside the kernel.
    # TODO(synk): for k > 1 this shares the base noise across a row's experts
    #             (different correlation structure than independent torch.normal
    #             per expert; distribution per (row, expert) is identical).
    dp_del, dp_eps = 0.05, 1.0
    noise_coeff = 0.1 * math.sqrt(2.0 * math.log(1.25 / dp_del)) / dp_eps
    base_noise = jax.random.normal(key_dp, (Bp, D), jnp.float32)

    y_pad = moe_experts_combine(
        x_p, base_noise, prep["w_experts_bf16"], prep["b_experts"], gates_eb1,
        noise_coeff=noise_coeff, tb=tb, tk=tk, vmem_limit_bytes=vmem_limit_bytes)
    return y_pad[:B, :d_out]


def init_params(key, input_size, output_size, num_experts):
    kg, kn, kw, kb = jax.random.split(key, 4)
    # NOTE: the reference __init__ uses torch.zeros for w_gate / w_noise; small
    # deterministic random values are used here so the gating matmul is exercised.
    w_gate = 0.1 * jax.random.normal(kg, (input_size, num_experts), jnp.float32)
    w_noise = 0.1 * jax.random.normal(kn, (input_size, num_experts), jnp.float32)
    # nn.Linear default init: U(-1/sqrt(in), 1/sqrt(in)); stored as [E, D_in, D_out]
    bound = 1.0 / math.sqrt(input_size)
    w_experts = jax.random.uniform(kw, (num_experts, input_size, output_size),
                                   jnp.float32, minval=-bound, maxval=bound)
    b_experts = jax.random.uniform(kb, (num_experts, output_size),
                                   jnp.float32, minval=-bound, maxval=bound)
    return {"w_gate": w_gate, "w_noise": w_noise,
            "w_experts": w_experts, "b_experts": b_experts}


if __name__ == "__main__":
    B, D_IN, D_OUT, NUM_EXPERTS, K = 8, 32, 32, 4, 1

    key = jax.random.PRNGKey(0)
    kx, kp, knoise = jax.random.split(key, 3)
    x = jax.random.normal(kx, (B, D_IN), jnp.float32)
    params = init_params(kp, D_IN, D_OUT, NUM_EXPERTS)
    prep = prepare_moe_params(params, train=True)   # hoisted weight preprocessing

    y = moe_forward(x, prep, k=K, train=True, noise_key=knoise)
    y = jax.block_until_ready(y)

    assert y.shape == (B, D_OUT)
    assert bool(jnp.all(jnp.isfinite(y)))
    print("KERNEL_OK")
</pallas_src>

<mosaic_0001>
module attributes {stable_mosaic.version = 11 : i64} {
  func.func @_gating_kernel(%arg0: i32, %arg1: memref<8x32xf32, #tpu.memory_space<vmem>>, %arg2: memref<32x128xbf16, #tpu.memory_space<vmem>>, %arg3: memref<8x128xf32, #tpu.memory_space<vmem>>) attributes {dimension_semantics = [#tpu.dimension_semantics<parallel>], iteration_bounds = array<i64: 1>, scalar_prefetch = 0 : i64, scratch_operands = 0 : i64, tpu.core_type = #tpu.core_type<tc>, window_params = [{transform_indices = @transform_0, window_bounds = array<i64: 8, 32>}, {pipeline_mode = #tpu.pipeline_mode<synchronous>, transform_indices = @transform_1, window_bounds = array<i64: 32, 128>}, {transform_indices = @transform_2, window_bounds = array<i64: 8, 128>}]} {
    %c0 = arith.constant 0 : index
    %c0_0 = arith.constant 0 : index
    %0 = vector.load %arg1[%c0, %c0_0] : memref<8x32xf32, #tpu.memory_space<vmem>>, vector<8x32xf32>
    %1 = arith.truncf %0 : vector<8x32xf32> to vector<8x32xbf16>
    %c0_1 = arith.constant 0 : index
    %c0_2 = arith.constant 0 : index
    %2 = vector.load %arg2[%c0_1, %c0_2] : memref<32x128xbf16, #tpu.memory_space<vmem>>, vector<32x128xbf16>
    %cst = arith.constant dense<0.000000e+00> : vector<8x128xf32>
    %3 = tpu.matmul %1, %2, %cst {dimension_numbers = #tpu.dot_dimension_numbers<[1], [0], [0], [1], [0, 0, 1, 1], [], []>} : vector<8x32xbf16>, vector<32x128xbf16>, vector<8x128xf32> -> vector<8x128xf32>
    %c0_3 = arith.constant 0 : index
    %c0_4 = arith.constant 0 : index
    %4 = vector.load %arg3[%c0_3, %c0_4] : memref<8x128xf32, #tpu.memory_space<vmem>>, vector<8x128xf32>
    tpu.vector_store %arg3[%c0_3, %c0_4], %3 {strides = array<i32>} : memref<8x128xf32, #tpu.memory_space<vmem>>, vector<8x128xf32>,
    return
  }
  func.func @transform_0(%arg0: i32) -> (i32, i32) {
    %c0_i32 = arith.constant 0 : i32
    %c0_i32_0 = arith.constant 0 : i32
    return %arg0, %c0_i32 : i32, i32
  }
  func.func @transform_1(%arg0: i32) -> (i32, i32) {
    %c0_i32 = arith.constant 0 : i32
    %c0_i32_0 = arith.constant 0 : i32
    %c0_i32_1 = arith.constant 0 : i32
    return %c0_i32, %c0_i32_0 : i32, i32
  }
  func.func @transform_2(%arg0: i32) -> (i32, i32) {
    %c0_i32 = arith.constant 0 : i32
    %c0_i32_0 = arith.constant 0 : i32
    return %arg0, %c0_i32 : i32, i32
  }
}

</mosaic_0001>

<bundles_post_ra>
// kernel: tpu_custom_call.1
= control target key start
LH: loop header
LB: loop body
LE: loop exit
PB: predicated region body
PF: predicated region fallthrough
CT: control target
= control target key end

     0   :  { %7 = vsyncpa [#allocation3], 0  ;;  %s278_s0 = inlined_call_operand.hbm [shape: f32[8,32], index: 0, kind: input, shape index: {}]   ;;  %s279_s1 = inlined_call_operand.hbm [shape: bf16[32,128], index: 1, kind: input, shape index: {}]   ;;  %s280_s2 = inlined_call_operand.hbm [shape: f32[8,128], index: 2, kind: output, shape index: {}]  }
   0x1   :  { %8 = vsyncpa [#allocation6], 0 }
   0x2   :  { %9 = vsyncpa [#allocation4], 0  ;;  %s213_s9 = smov [#allocation2]   ;;  %s214_s11 = smov [#allocation5]  }
   0x3   :  { %s16_s10 = sshll.u32 %s213_s9, 4  ;;  %s25_s12 = sshll.u32 %s214_s11, 4  ;;  %s17_s10 = int_to_ptr.vmem [resolvable:$true] %s16_s10  ;;  %s235_s12 = int_to_ptr.vmem [resolvable:$true] %s25_s12 }
   0x4   :  { %s141_s15 = scalar_lea.hbm %s278_s0, 128 }
   0x5   :  { %p142_p0 = scmp.ne.s32.totalorder %s278_s0, %s141_s15  ;;  %p145_p1 = scmp.lt.u32.totalorder %s141_s15, %s278_s0 }
   0x7   :  { %p147_p2 = pnand %p145_p1, %p142_p0 }
   0x9   :  { %150 = shalt.err (!%p147_p2)
}
   0xa   :  { %s151_s20 = scalar_lea.vmem %s17_s10, 128  ;;  %p156_p4 = scmp.lt.s32.totalorder %s17_s10, %s17_s10 }
   0xb   :  { %p152_p3 = scmp.ne.s32.totalorder %s17_s10, %s151_s20  ;;  %p157_p5 = scmp.lt.s32.totalorder %s151_s20, %s151_s20 }
   0xd   :  { %p158_p6 = por %p157_p5, %p156_p4 }
   0xf   :  { %p159_p7 = pnand %p158_p6, %p152_p3 }
  0x11   :  { %162 = shalt.err (!%p159_p7)
}
  0x12   :  { %19 = dma.hbm_to_vmem [thread:$0]  %s278_s0, 128, %s17_s10, [#allocation3]  }
  0x13   :  { %s163_s25 = scalar_lea.hbm %s279_s1, 256 }
  0x14   :  { %p164_p8 = scmp.ne.s32.totalorder %s279_s1, %s163_s25  ;;  %p167_p9 = scmp.lt.u32.totalorder %s163_s25, %s279_s1 }
  0x16   :  { %p169_p10 = pnand %p167_p9, %p164_p8 }
  0x18   :  { %172 = shalt.err (!%p169_p10)
}
  0x19   :  { %s173_s30 = scalar_lea.vmem %s235_s12, 256  ;;  %p178_p12 = scmp.lt.s32.totalorder %s235_s12, %s235_s12 }
  0x1a   :  { %p174_p11 = scmp.ne.s32.totalorder %s235_s12, %s173_s30  ;;  %p179_p13 = scmp.lt.s32.totalorder %s173_s30, %s173_s30 }
  0x1c   :  { %p180_p0 = por %p179_p13, %p178_p12 }
  0x1e   :  { %p181_p1 = pnand %p180_p0, %p174_p11 }
  0x20   :  { %184 = shalt.err (!%p181_p1)
}
  0x21   :  { %s215_s0 = smov 64   ;;  %s216_s3 = smov 4  }
  0x22   :  { %31 = dma.hbm_to_vmem [thread:$0]  %s279_s1, 256, %s235_s12, [#allocation6], %s215_s0, %s215_s0, %s216_s3  }
  0x23   :  { %207 = dma.done.wait [#allocation3], 128  }
  0x24   :  { %208 = vsyncadd [#allocation3], 4294967168 }
  0x25   :  { %209 = dma.done.wait [#allocation6], 256  }
  0x26   :  { %210 = vsyncadd [#allocation6], 4294967040  ;;  %v217_v0 = vmov 0.0   ;;  %vm218_vm0 = vmmov 0   ;;  %v139_v1 = vld [vmem:[#allocation5] sm:$0xff]   ;;  %v140_v2 = vld [vmem:[#allocation5 + $0x8] sm:$0xff]  }
  0x27   :  { %124 = vmatprep.subr.bf16.mxu0 %v217_v0  ;;  %128 = vmatprep.mubr.msk.bf16.mxu0 %vm218_vm0, %v217_v0  ;;  %v39_v3 = vld [vmem:[#allocation2] sm:$0xff]  ;;  %vm57_vm1 = vcmask 261120   ;;  %s219_s6 = smov [#allocation7]  }
  0x28   :  { %125 = vmatpush3.bf16.msra.mxu0 %v139_v1  ;;  %v40_v4 = vpack.c.bf16 %v39_v3, %v39_v3  ;;  %s108_s7 = sshll.u32 %s219_s6, 4  ;;  %s109_s7 = int_to_ptr.vmem [resolvable:$true] %s108_s7 }
  0x29   :  { %126 = vmatprep.subr.bf16.mxu0 %v217_v0  ;;  %s185_s1 = scalar_lea.vmem %s109_s7, 128  ;;  %p190_p3 = scmp.lt.s32.totalorder %s109_s7, %s109_s7 }
  0x2a   :  { %p186_p2 = scmp.ne.s32.totalorder %s109_s7, %s185_s1  ;;  %p191_p4 = scmp.lt.s32.totalorder %s185_s1, %s185_s1 }
  0x2c   :  { %127 = vmatpush3.bf16.msra.mxu0 %v140_v2  ;;  %p192_p5 = por %p191_p4, %p190_p3 }
  0x2e   :  { %p193_p6 = pnand %p192_p5, %p186_p2 }
  0x2f   :  { %129 = vmatmul.mubr.msk.bf16.vlgmr.msra.gmra.mrb[0].mxu0 %vm57_vm1, %v40_v4 }
 0x102   :  { %v95_v5 = vpop.f32.mrb[0].mxu0 }
 0x103   :  { %101 = vst [vmem:[#allocation7] sm:$0xff] %v95_v5  ;;  %v130_v6 = vpop.f32.mrb[1].mxu0 }
 0x104   :  { %v98_v7 = vpop.f32.mrb[2].mxu0 }
 0x105   :  { %196 = shalt.err (!%p193_p6)
}
 0x106   :  { %s197_s10 = scalar_lea.hbm %s280_s2, 128 }
 0x107   :  { %p198_p7 = scmp.ne.s32.totalorder %s280_s2, %s197_s10  ;;  %p201_p8 = scmp.lt.u32.totalorder %s197_s10, %s280_s2 }
 0x109   :  { %p203_p9 = pnand %p201_p8, %p198_p7 }
 0x10b   :  { %206 = shalt.err (!%p203_p9)
}
 0x10c   :  { %111 = dma.vmem_to_hbm [thread:$0]  %s109_s7, 128, %s280_s2, [#allocation4]   ;;  %v131_v8 = vpop.f32.mrb[3].mxu0 }
 0x10d   :  { %211 = dma.done.wait [#allocation4], 128  }
 0x10e   :  { %212 = vsyncadd [#allocation4], 4294967168 }
 0x10f   :  { %115 = vsyncpa [#allocation3], 1 }
 0x110   :  { %116 = vsyncpa [#allocation6], 1 }
 0x111   :  { %117 = vsyncpa [#allocation4], 1 }

</bundles_post_ra>
